<compile_context>
chip_gen: v7x
topology: tpu7x:2x2x1
jax: 0.10.0
libtpu: 0.0.40
codegen_flags: <defaults>
</compile_context>

<pallas_src>
import jax
import jax.numpy as jnp
from jax.experimental import pallas as pl
from jax.experimental.pallas import tpu as pltpu

LANE = 128       # vreg lane width; padded width of layer-2 activations
H1 = 128         # dense1 out features
H2 = 16          # dense2 out features (padded to LANE inside the kernel)
OUT = 2          # dense3 out features
OUT_PAD = 8      # sublane-padded rows of the transposed output slab


def _round_up(x, m):
    return ((x + m - 1) // m) * m


def mlp_kernel(x_ref, w1_ref, b1_ref, w2_ref, b2_ref, w3t_ref, b3_ref, o_ref):
    # x tile: (TILE_B, F) f32 -> bf16 for the MXU
    x = x_ref[...].astype(jnp.bfloat16)

    # dense1 + ReLU -> (TILE_B, 128); f32 accumulate, f32 elementwise
    h1 = jnp.dot(x, w1_ref[...], preferred_element_type=jnp.float32)
    h1 = jnp.maximum(h1 + b1_ref[...], 0.0)

    # dense2 + ReLU -> (TILE_B, 128); cols >= 16 stay exactly zero (padded w2/b2)
    h2 = jnp.dot(h1.astype(jnp.bfloat16), w2_ref[...],
                 preferred_element_type=jnp.float32)
    h2 = jnp.maximum(h2 + b2_ref[...], 0.0)

    # dense3 + tanh, computed transposed so the store is a compact lane-dense
    # (OUT_PAD, TILE_B) slab (batch on the lane axis):
    #   h3^T = w3^T @ h2^T   with w3^T zero-padded to (OUT_PAD, 128)
    h2t = jnp.transpose(h2).astype(jnp.bfloat16)               # (128, TILE_B), XLU
    h3t = jnp.dot(w3t_ref[...], h2t,
                  preferred_element_type=jnp.float32)          # (OUT_PAD, TILE_B)
    o_ref[...] = jnp.tanh(h3t + b3_ref[...]).astype(o_ref.dtype)


def _pad_params_for_kernel(params):
    """Zero-pad narrow layers to full lanes; store matmul weights as bf16."""
    w1, b1, w2, b2, w3, b3 = params
    w2p = jnp.zeros((H1, LANE), jnp.float32).at[:, :H2].set(w2)
    b2p = jnp.zeros((1, LANE), jnp.float32).at[:, :H2].set(b2)
    # Layer 3 is used transposed: (OUT_PAD, LANE) with valid block [:OUT, :H2] = w3^T
    w3tp = jnp.zeros((OUT_PAD, LANE), jnp.float32).at[:OUT, :H2].set(w3.T)
    b3p = jnp.zeros((OUT_PAD, 1), jnp.float32).at[:OUT, 0].set(b3.reshape(-1))
    return (w1.astype(jnp.bfloat16), b1,
            w2p.astype(jnp.bfloat16), b2p,
            w3tp.astype(jnp.bfloat16), b3p)


def _choose_tile_b(B, tile_b):
    if tile_b is None:
        # Large tiles amortize the ~0.35us/step pipeline cost; >=2 grid steps
        # whenever B allows so the "parallel" axis shards across v7x's 2 TCs.
        tile_b = min(2048, max(256, _round_up(-(-B // 2), 256)))
    else:
        tile_b = max(128, _round_up(tile_b, 128))
    return tile_b


def neural_model_forward(x, params, *, tile_b=None):
    """x: (B, F) f32; params: (w1,b1,w2,b2,w3,b3) with w_i of shape (in, out)."""
    B, F = x.shape
    w1, b1, w2p, b2p, w3tp, b3p = _pad_params_for_kernel(params)

    tile_b = _choose_tile_b(B, tile_b)
    num_tiles = pl.cdiv(B, tile_b)     # ragged last x block handled by Pallas
    bp = num_tiles * tile_b            # padded width of the (tiny) output slab only

    flops = 2 * bp * (F * H1 + H1 * LANE + OUT_PAD * LANE)
    bytes_accessed = (B * F * 4 + OUT_PAD * bp * 4
                      + sum(int(a.size) * a.dtype.itemsize
                            for a in (w1, b1, w2p, b2p, w3tp, b3p)))

    out_t = pl.pallas_call(
        mlp_kernel,
        out_shape=jax.ShapeDtypeStruct((OUT_PAD, bp), jnp.float32),
        grid=(num_tiles,),
        in_specs=[
            pl.BlockSpec((tile_b, F), lambda i: (i, 0)),      # x: batch-tiled
            pl.BlockSpec((F, H1), lambda i: (0, 0)),          # w1 (bf16), resident
            pl.BlockSpec((1, H1), lambda i: (0, 0)),          # b1
            pl.BlockSpec((H1, LANE), lambda i: (0, 0)),       # w2 padded (bf16)
            pl.BlockSpec((1, LANE), lambda i: (0, 0)),        # b2 padded
            pl.BlockSpec((OUT_PAD, LANE), lambda i: (0, 0)),  # w3^T padded (bf16)
            pl.BlockSpec((OUT_PAD, 1), lambda i: (0, 0)),     # b3 padded
        ],
        out_specs=pl.BlockSpec((OUT_PAD, tile_b), lambda i: (0, i)),
        compiler_params=pltpu.CompilerParams(
            dimension_semantics=("parallel",)),
        cost_estimate=pl.CostEstimate(
            flops=flops, transcendentals=OUT_PAD * bp,
            bytes_accessed=bytes_accessed),
    )(x, w1, b1, w2p, b2p, w3tp, b3p)

    # Compact (OUT_PAD, bp) slab -> (B, OUT): trivial slice + transpose of a
    # tiny buffer (vs. re-reading a (Bp, 128) padded output in the old version).
    return out_t[:OUT, :B].T


def init_params(key, in_features):
    # Deterministic init mimicking nn.Linear uniform(-1/sqrt(in), 1/sqrt(in)),
    # with weights stored as (in, out) so the kernel computes x @ W + b.
    def linear_init(k, fan_in, fan_out):
        kw, kb = jax.random.split(k)
        bound = 1.0 / jnp.sqrt(fan_in)
        w = jax.random.uniform(kw, (fan_in, fan_out), jnp.float32, -bound, bound)
        b = jax.random.uniform(kb, (1, fan_out), jnp.float32, -bound, bound)
        return w, b

    k1, k2, k3 = jax.random.split(key, 3)
    w1, b1 = linear_init(k1, in_features, H1)
    w2, b2 = linear_init(k2, H1, H2)
    w3, b3 = linear_init(k3, H2, OUT)
    return (w1, b1, w2, b2, w3, b3)


def reference_forward_f32(x, params):
    w1, b1, w2, b2, w3, b3 = params
    h1 = jnp.maximum(x @ w1 + b1, 0.0)
    h2 = jnp.maximum(h1 @ w2 + b2, 0.0)
    return jnp.tanh(h2 @ w3 + b3)


def reference_forward_bf16(x, params):
    # Mirrors the kernel's bf16-operand / f32-accumulate matmuls.
    w1, b1, w2, b2, w3, b3 = params
    h1 = jnp.dot(x.astype(jnp.bfloat16), w1.astype(jnp.bfloat16),
                 preferred_element_type=jnp.float32)
    h1 = jnp.maximum(h1 + b1, 0.0)
    h2 = jnp.dot(h1.astype(jnp.bfloat16), w2.astype(jnp.bfloat16),
                 preferred_element_type=jnp.float32)
    h2 = jnp.maximum(h2 + b2, 0.0)
    h3 = jnp.dot(h2.astype(jnp.bfloat16), w3.astype(jnp.bfloat16),
                 preferred_element_type=jnp.float32)
    return jnp.tanh(h3 + b3)


if __name__ == "__main__":
    key = jax.random.PRNGKey(0)
    kx, kp, kx2 = jax.random.split(key, 3)

    B, IN_FEATURES = 8, 32
    x = jax.random.normal(kx, (B, IN_FEATURES), jnp.float32)
    params = init_params(kp, IN_FEATURES)

    out = jax.block_until_ready(neural_model_forward(x, params))
    assert out.shape == (B, OUT)
    assert jnp.allclose(out, reference_forward_bf16(x, params), atol=1e-2), \
        "mismatch vs bf16 reference"
    assert jnp.allclose(out, reference_forward_f32(x, params), atol=5e-2), \
        "mismatch vs f32 reference"

    # Multi-tile grid + ragged last block (B not a multiple of tile_b, no pad).
    B2 = 300
    x2 = jax.random.normal(kx2, (B2, IN_FEATURES), jnp.float32)
    out2 = jax.block_until_ready(neural_model_forward(x2, params, tile_b=128))
    assert out2.shape == (B2, OUT)
    assert jnp.allclose(out2, reference_forward_bf16(x2, params), atol=1e-2), \
        "mismatch vs bf16 reference (tiled batch)"

    print("KERNEL_OK")
</pallas_src>

<mosaic_0001>
module attributes {stable_mosaic.version = 11 : i64} {
  func.func @mlp_kernel(%arg0: i32, %arg1: memref<256x32xf32, #tpu.memory_space<vmem>>, %arg2: memref<32x128xbf16, #tpu.memory_space<vmem>>, %arg3: memref<1x128xf32, #tpu.memory_space<vmem>>, %arg4: memref<128x128xbf16, #tpu.memory_space<vmem>>, %arg5: memref<1x128xf32, #tpu.memory_space<vmem>>, %arg6: memref<8x128xbf16, #tpu.memory_space<vmem>>, %arg7: memref<8x1xf32, #tpu.memory_space<vmem>>, %arg8: memref<8x256xf32, #tpu.memory_space<vmem>>) attributes {dimension_semantics = [#tpu.dimension_semantics<parallel>], iteration_bounds = array<i64: 1>, scalar_prefetch = 0 : i64, scratch_operands = 0 : i64, tpu.core_type = #tpu.core_type<tc>, window_params = [{transform_indices = @transform_0, window_bounds = array<i64: 256, 32>}, {pipeline_mode = #tpu.pipeline_mode<synchronous>, transform_indices = @transform_1, window_bounds = array<i64: 32, 128>}, {pipeline_mode = #tpu.pipeline_mode<synchronous>, transform_indices = @transform_2, window_bounds = array<i64: 1, 128>}, {pipeline_mode = #tpu.pipeline_mode<synchronous>, transform_indices = @transform_3, window_bounds = array<i64: 128, 128>}, {pipeline_mode = #tpu.pipeline_mode<synchronous>, transform_indices = @transform_4, window_bounds = array<i64: 1, 128>}, {pipeline_mode = #tpu.pipeline_mode<synchronous>, transform_indices = @transform_5, window_bounds = array<i64: 8, 128>}, {pipeline_mode = #tpu.pipeline_mode<synchronous>, transform_indices = @transform_6, window_bounds = array<i64: 8, 1>}, {transform_indices = @transform_7, window_bounds = array<i64: 8, 256>}]} {
    %c0 = arith.constant 0 : index
    %c0_0 = arith.constant 0 : index
    %0 = vector.load %arg1[%c0, %c0_0] : memref<256x32xf32, #tpu.memory_space<vmem>>, vector<256x32xf32>
    %1 = arith.truncf %0 : vector<256x32xf32> to vector<256x32xbf16>
    %c0_1 = arith.constant 0 : index
    %c0_2 = arith.constant 0 : index
    %2 = vector.load %arg2[%c0_1, %c0_2] : memref<32x128xbf16, #tpu.memory_space<vmem>>, vector<32x128xbf16>
    %cst = arith.constant dense<0.000000e+00> : vector<256x128xf32>
    %3 = tpu.matmul %1, %2, %cst {dimension_numbers = #tpu.dot_dimension_numbers<[1], [0], [0], [1], [0, 0, 1, 1], [], []>} : vector<256x32xbf16>, vector<32x128xbf16>, vector<256x128xf32> -> vector<256x128xf32>
    %c0_3 = arith.constant 0 : index
    %c0_4 = arith.constant 0 : index
    %4 = vector.load %arg3[%c0_3, %c0_4] : memref<1x128xf32, #tpu.memory_space<vmem>>, vector<1x128xf32>
    %5 = vector.broadcast %4 : vector<1x128xf32> to vector<256x128xf32>
    %6 = arith.addf %3, %5 : vector<256x128xf32>
    %cst_5 = arith.constant 0.000000e+00 : f32
    %7 = vector.broadcast %cst_5 : f32 to vector<256x128xf32>
    %8 = arith.maximumf %6, %7 : vector<256x128xf32>
    %9 = arith.truncf %8 : vector<256x128xf32> to vector<256x128xbf16>
    %c0_6 = arith.constant 0 : index
    %c0_7 = arith.constant 0 : index
    %10 = vector.load %arg4[%c0_6, %c0_7] : memref<128x128xbf16, #tpu.memory_space<vmem>>, vector<128x128xbf16>
    %cst_8 = arith.constant dense<0.000000e+00> : vector<256x128xf32>
    %11 = tpu.matmul %9, %10, %cst_8 {dimension_numbers = #tpu.dot_dimension_numbers<[1], [0], [0], [1], [0, 0, 1, 1], [], []>} : vector<256x128xbf16>, vector<128x128xbf16>, vector<256x128xf32> -> vector<256x128xf32>
    %c0_9 = arith.constant 0 : index
    %c0_10 = arith.constant 0 : index
    %12 = vector.load %arg5[%c0_9, %c0_10] : memref<1x128xf32, #tpu.memory_space<vmem>>, vector<1x128xf32>
    %13 = vector.broadcast %12 : vector<1x128xf32> to vector<256x128xf32>
    %14 = arith.addf %11, %13 : vector<256x128xf32>
    %cst_11 = arith.constant 0.000000e+00 : f32
    %15 = vector.broadcast %cst_11 : f32 to vector<256x128xf32>
    %16 = arith.maximumf %14, %15 : vector<256x128xf32>
    %17 = tpu.transpose %16, [1, 0] : vector<256x128xf32> -> vector<128x256xf32>
    %18 = arith.truncf %17 : vector<128x256xf32> to vector<128x256xbf16>
    %c0_12 = arith.constant 0 : index
    %c0_13 = arith.constant 0 : index
    %19 = vector.load %arg6[%c0_12, %c0_13] : memref<8x128xbf16, #tpu.memory_space<vmem>>, vector<8x128xbf16>
    %cst_14 = arith.constant dense<0.000000e+00> : vector<8x256xf32>
    %20 = tpu.matmul %19, %18, %cst_14 {dimension_numbers = #tpu.dot_dimension_numbers<[1], [0], [0], [1], [0, 0, 1, 1], [], []>} : vector<8x128xbf16>, vector<128x256xbf16>, vector<8x256xf32> -> vector<8x256xf32>
    %c0_15 = arith.constant 0 : index
    %c0_16 = arith.constant 0 : index
    %21 = vector.load %arg7[%c0_15, %c0_16] : memref<8x1xf32, #tpu.memory_space<vmem>>, vector<8x1xf32>
    %22 = vector.broadcast %21 : vector<8x1xf32> to vector<8x256xf32>
    %23 = arith.addf %20, %22 : vector<8x256xf32>
    %24 = math.tanh %23 : vector<8x256xf32>
    %c0_17 = arith.constant 0 : index
    %c0_18 = arith.constant 0 : index
    %25 = vector.load %arg8[%c0_17, %c0_18] : memref<8x256xf32, #tpu.memory_space<vmem>>, vector<8x256xf32>
    tpu.vector_store %arg8[%c0_17, %c0_18], %24 {strides = array<i32>} : memref<8x256xf32, #tpu.memory_space<vmem>>, vector<8x256xf32>,
    return
  }
  func.func @transform_0(%arg0: i32) -> (i32, i32) {
    %c0_i32 = arith.constant 0 : i32
    %c0_i32_0 = arith.constant 0 : i32
    return %arg0, %c0_i32 : i32, i32
  }
  func.func @transform_1(%arg0: i32) -> (i32, i32) {
    %c0_i32 = arith.constant 0 : i32
    %c0_i32_0 = arith.constant 0 : i32
    %c0_i32_1 = arith.constant 0 : i32
    return %c0_i32, %c0_i32_0 : i32, i32
  }
  func.func @transform_2(%arg0: i32) -> (i32, i32) {
    %c0_i32 = arith.constant 0 : i32
    %c0_i32_0 = arith.constant 0 : i32
    %c0_i32_1 = arith.constant 0 : i32
    return %c0_i32, %c0_i32_0 : i32, i32
  }
  func.func @transform_3(%arg0: i32) -> (i32, i32) {
    %c0_i32 = arith.constant 0 : i32
    %c0_i32_0 = arith.constant 0 : i32
    %c0_i32_1 = arith.constant 0 : i32
    return %c0_i32, %c0_i32_0 : i32, i32
  }
  func.func @transform_4(%arg0: i32) -> (i32, i32) {
    %c0_i32 = arith.constant 0 : i32
    %c0_i32_0 = arith.constant 0 : i32
    %c0_i32_1 = arith.constant 0 : i32
    return %c0_i32, %c0_i32_0 : i32, i32
  }
  func.func @transform_5(%arg0: i32) -> (i32, i32) {
    %c0_i32 = arith.constant 0 : i32
    %c0_i32_0 = arith.constant 0 : i32
    %c0_i32_1 = arith.constant 0 : i32
    return %c0_i32, %c0_i32_0 : i32, i32
  }
  func.func @transform_6(%arg0: i32) -> (i32, i32) {
    %c0_i32 = arith.constant 0 : i32
    %c0_i32_0 = arith.constant 0 : i32
    %c0_i32_1 = arith.constant 0 : i32
    return %c0_i32, %c0_i32_0 : i32, i32
  }
  func.func @transform_7(%arg0: i32) -> (i32, i32) {
    %c0_i32 = arith.constant 0 : i32
    %c0_i32_0 = arith.constant 0 : i32
    return %c0_i32, %arg0 : i32, i32
  }
}

</mosaic_0001>

<bundles_post_ra>
// kernel: tpu_custom_call.1
= control target key start
LH: loop header
LB: loop body
LE: loop exit
PB: predicated region body
PF: predicated region fallthrough
CT: control target
= control target key end

     0   :  { %12 = vsyncpa [#allocation3], 0  ;;  %s1446_s0 = inlined_call_operand.vmem [shape: f32[8,32], index: 0, kind: input, shape index: {}]   ;;  %s1447_s1 = inlined_call_operand.hbm [shape: bf16[32,128], index: 1, kind: input, shape index: {}]   ;;  %s1448_s2 = inlined_call_operand.vmem [shape: f32[1,128], index: 2, kind: input, shape index: {}]   ;;  %s1449_s3 = inlined_call_operand.hbm [shape: bf16[128,128], index: 3, kind: input, shape index: {}]   ;;  %s1450_s4 = inlined_call_operand.vmem [shape: f32[1,128], index: 4, kind: input, shape index: {}]   ;;  %s1451_s5 = inlined_call_operand.vmem [shape: bf16[8,128], index: 5, kind: input, shape index: {}]   ;;  %s1452_s6 = inlined_call_operand.vmem [shape: f32[8,1], index: 6, kind: input, shape index: {}]   ;;  %s1453_s7 = inlined_call_operand.hbm [shape: f32[8,256], index: 7, kind: output, shape index: {}]  }
   0x1   :  { %13 = vsyncpa [#allocation6], 0 }
   0x2   :  { %14 = vsyncpa [#allocation4], 0  ;;  %s1157_s24 = smov [#allocation2]   ;;  %s1085_s28 = scalar_lea.hbm %s1447_s1, 256 }
   0x3   :  { %s22_s25 = sshll.u32 %s1157_s24, 4  ;;  %p1086_p0 = scmp.ne.s32.totalorder %s1447_s1, %s1085_s28  ;;  %s23_s25 = int_to_ptr.vmem [resolvable:$true] %s22_s25 }
   0x4   :  { %p1089_p1 = scmp.lt.u32.totalorder %s1085_s28, %s1447_s1 }
   0x6   :  { %p1091_p2 = pnand %p1089_p1, %p1086_p0 }
   0x8   :  { %1094 = shalt.err (!%p1091_p2)
}
   0x9   :  { %s1095_s10 = scalar_lea.vmem %s23_s25, 256  ;;  %p1100_p4 = scmp.lt.s32.totalorder %s23_s25, %s23_s25 }
   0xa   :  { %p1096_p3 = scmp.ne.s32.totalorder %s23_s25, %s1095_s10  ;;  %p1101_p5 = scmp.lt.s32.totalorder %s1095_s10, %s1095_s10 }
   0xc   :  { %p1102_p6 = por %p1101_p5, %p1100_p4 }
   0xe   :  { %p1103_p7 = pnand %p1102_p6, %p1096_p3 }
  0x10   :  { %1106 = shalt.err (!%p1103_p7)
}
  0x11   :  { %s1158_s11 = smov 64   ;;  %s1159_s12 = smov 4  }
  0x12   :  { %28 = dma.hbm_to_vmem [thread:$0]  %s1447_s1, 256, %s23_s25, [#allocation3], %s1158_s11, %s1158_s11, %s1159_s12  }
  0x13   :  { %s1160_s15 = smov [#allocation5]   ;;  %s1107_s19 = scalar_lea.hbm %s1449_s3, 1024 }
  0x14   :  { %s36_s16 = sshll.u32 %s1160_s15, 4  ;;  %p1108_p8 = scmp.ne.s32.totalorder %s1449_s3, %s1107_s19  ;;  %s37_s16 = int_to_ptr.vmem [resolvable:$true] %s36_s16 }
  0x15   :  { %p1111_p9 = scmp.lt.u32.totalorder %s1107_s19, %s1449_s3 }
  0x17   :  { %p1113_p10 = pnand %p1111_p9, %p1108_p8 }
  0x19   :  { %1116 = shalt.err (!%p1113_p10)
}
  0x1a   :  { %s1117_s24 = scalar_lea.vmem %s37_s16, 1024  ;;  %p1122_p12 = scmp.lt.s32.totalorder %s37_s16, %s37_s16 }
  0x1b   :  { %p1118_p11 = scmp.ne.s32.totalorder %s37_s16, %s1117_s24  ;;  %p1123_p13 = scmp.lt.s32.totalorder %s1117_s24, %s1117_s24 }
  0x1d   :  { %p1124_p0 = por %p1123_p13, %p1122_p12 }
  0x1f   :  { %p1125_p1 = pnand %p1124_p0, %p1118_p11 }
  0x21   :  { %1128 = shalt.err (!%p1125_p1)
}
  0x22   :  { %42 = dma.hbm_to_vmem [thread:$0]  %s1449_s3, 1024, %s37_s16, [#allocation6], %s1158_s11, %s1158_s11, %s1159_s12  }
  0x23   :  { %1151 = dma.done.wait [#allocation3], 256  }
  0x24   :  { %1152 = vsyncadd [#allocation3], 4294967040 }
  0x25   :  { %1153 = dma.done.wait [#allocation6], 1024  }
  0x26   :  { %1154 = vsyncadd [#allocation6], 4294966272  ;;  %v1071_v0 = vld [vmem:[#allocation2] sm:$0xff]   ;;  %v1072_v1 = vld [vmem:[#allocation2 + $0x8] sm:$0xff]   ;;  %vm127_vm0 = vcmask 261120   ;;  %s1162_s20 = smov [#allocation7]  }
  0x27   :  { %867 = vmatprep.subr.bf16.mxu0 %v1071_v0  ;;  %v56_v2 = vld [vmem:[%s1446_s0] sm:$0xff]  ;;  %v57_v3 = vld [vmem:[%s1446_s0 + $0x8] sm:$0xff]  ;;  %v58_v5 = vld [vmem:[%s1446_s0 + $0x10] sm:$0xff]  ;;  %s787_s21 = sshll.u32 %s1162_s20, 4  ;;  %s788_s21 = int_to_ptr.vmem [resolvable:$true] %s787_s21 }
  0x28   :  { %868 = vmatpush3.bf16.msra.mxu0 %v1071_v0  ;;  %v88_v4 = vpack.c.bf16 %v57_v3, %v56_v2  ;;  %v59_v6 = vld [vmem:[%s1446_s0 + $0x18] sm:$0xff]  ;;  %v60_v7 = vld [vmem:[%s1446_s0 + $0x20] sm:$0xff]  ;;  %v61_v8 = vld [vmem:[%s1446_s0 + $0x28] sm:$0xff]  ;;  %s1129_s22 = scalar_lea.vmem %s788_s21, 256  ;;  %p1134_p3 = scmp.lt.s32.totalorder %s788_s21, %s788_s21 }
  0x29   :  { %869 = vmatprep.subr.bf16.mxu0 %v1072_v1  ;;  %v89_v9 = vpack.c.bf16 %v59_v6, %v58_v5  ;;  %v90_v10 = vpack.c.bf16 %v61_v8, %v60_v7  ;;  %v62_v11 = vld [vmem:[%s1446_s0 + $0x30] sm:$0xff]  ;;  %v63_v12 = vld [vmem:[%s1446_s0 + $0x38] sm:$0xff]  ;;  %v64_v13 = vld [vmem:[%s1446_s0 + $0x40] sm:$0xff]  ;;  %p1130_p2 = scmp.ne.s32.totalorder %s788_s21, %s1129_s22  ;;  %p1135_p4 = scmp.lt.s32.totalorder %s1129_s22, %s1129_s22 }
  0x2a   :  { %871 = vmatprep.mubr.msk.bf16.mxu0 %vm127_vm0, %v88_v4  ;;  %v65_v14 = vld [vmem:[%s1446_s0 + $0x48] sm:$0xff]  ;;  %v1073_v15 = vld [vmem:[#allocation5] sm:$0xff]   ;;  %v91_v16 = vpack.c.bf16 %v63_v12, %v62_v11  ;;  %v1074_v17 = vld [vmem:[#allocation5 + $0x8] sm:$0xff]  }
  0x2b   :  { %v92_v18 = vpack.c.bf16 %v65_v14, %v64_v13  ;;  %903 = vmatprep.subr.bf16.mxu1 %v1073_v15  ;;  %v66_v19 = vld [vmem:[%s1446_s0 + $0x50] sm:$0xff]  ;;  %v1075_v20 = vld [vmem:[#allocation5 + $0x10] sm:$0xff]   ;;  %v67_v21 = vld [vmem:[%s1446_s0 + $0x58] sm:$0xff]  ;;  %p1136_p5 = por %p1135_p4, %p1134_p3 }
  0x2c   :  { %870 = vmatpush3.bf16.msra.mxu0 %v1072_v1  ;;  %904 = vmatpush3.bf16.msra.mxu1 %v1073_v15  ;;  %v68_v22 = vld [vmem:[%s1446_s0 + $0x60] sm:$0xff]  ;;  %v69_v23 = vld [vmem:[%s1446_s0 + $0x68] sm:$0xff]  ;;  %v93_v25 = vpack.c.bf16 %v67_v21, %v66_v19  ;;  %v1077_v27 = vld [vmem:[#allocation5 + $0x20] sm:$0xff]  }
  0x2d   :  { %905 = vmatprep.subr.bf16.mxu1 %v1074_v17  ;;  %v1076_v24 = vld [vmem:[#allocation5 + $0x18] sm:$0xff]   ;;  %v94_v26 = vpack.c.bf16 %v69_v23, %v68_v22  ;;  %v70_v28 = vld [vmem:[%s1446_s0 + $0x70] sm:$0xff]  ;;  %v71_v29 = vld [vmem:[%s1446_s0 + $0x78] sm:$0xff]  ;;  %p1137_p6 = pnand %p1136_p5, %p1130_p2 }
  0x2e   :  { %v72_v30 = vld [vmem:[%s1446_s0 + $0x80] sm:$0xff]  ;;  %v73_v31 = vld [vmem:[%s1446_s0 + $0x88] sm:$0xff]  ;;  %v1078_v32 = vld [vmem:[#allocation5 + $0x28] sm:$0xff]   ;;  %v95_v33 = vpack.c.bf16 %v71_v29, %v70_v28 }
  0x2f   :  { %872 = vmatmul.mubr.msk.bf16.vlgmr.msra.gmra.mrb[0].mxu0 %vm127_vm0, %v89_v9  ;;  %v96_v34 = vpack.c.bf16 %v73_v31, %v72_v30  ;;  %v74_v35 = vld [vmem:[%s1446_s0 + $0x90] sm:$0xff]  ;;  %v75_v36 = vld [vmem:[%s1446_s0 + $0x98] sm:$0xff]  ;;  %v76_v37 = vld [vmem:[%s1446_s0 + $0xa0] sm:$0xff] }
  0x30   :  { %875 = vmatprep.mubr.msk.bf16.mxu0 %vm127_vm0, %v90_v10  ;;  %906 = vmatpush3.bf16.msra.mxu1 %v1074_v17  ;;  %v77_v38 = vld [vmem:[%s1446_s0 + $0xa8] sm:$0xff]  ;;  %v97_v39 = vpack.c.bf16 %v75_v36, %v74_v35  ;;  %v78_v41 = vld [vmem:[%s1446_s0 + $0xb0] sm:$0xff]  ;;  %v79_v42 = vld [vmem:[%s1446_s0 + $0xb8] sm:$0xff] }
  0x31   :  { %907 = vmatprep.subr.bf16.mxu1 %v1075_v20  ;;  %v98_v40 = vpack.c.bf16 %v77_v38, %v76_v37  ;;  %v80_v43 = vld [vmem:[%s1446_s0 + $0xc0] sm:$0xff]  ;;  %v81_v44 = vld [vmem:[%s1446_s0 + $0xc8] sm:$0xff]  ;;  %v99_v45 = vpack.c.bf16 %v79_v42, %v78_v41  ;;  %v82_v47 = vld [vmem:[%s1446_s0 + $0xd0] sm:$0xff] }
  0x32   :  { %v100_v46 = vpack.c.bf16 %v81_v44, %v80_v43  ;;  %v83_v48 = vld [vmem:[%s1446_s0 + $0xd8] sm:$0xff]  ;;  %v84_v49 = vld [vmem:[%s1446_s0 + $0xe0] sm:$0xff]  ;;  %v85_v50 = vld [vmem:[%s1446_s0 + $0xe8] sm:$0xff] }
  0x33   :  { %v101_v51 = vpack.c.bf16 %v83_v48, %v82_v47  ;;  %v102_v52 = vpack.c.bf16 %v85_v50, %v84_v49  ;;  %v86_v53 = vld [vmem:[%s1446_s0 + $0xf0] sm:$0xff]  ;;  %v87_v54 = vld [vmem:[%s1446_s0 + $0xf8] sm:$0xff]  ;;  %v1079_v56 = vld [vmem:[#allocation5 + $0x30] sm:$0xff]  }
  0x34   :  { %908 = vmatpush3.bf16.msra.mxu1 %v1075_v20  ;;  %v103_v55 = vpack.c.bf16 %v87_v54, %v86_v53  ;;  %v1080_v57 = vld [vmem:[#allocation5 + $0x38] sm:$0xff]   ;;  %v1342_v58 = vld [vmem:[%s1448_s2] ss:$0 sm:$0xff] }
  0x35   :  { %909 = vmatprep.subr.bf16.mxu1 %v1076_v24 }
  0x37   :  { %876 = vmatmul.mubr.msk.bf16.gmra.mrb[4].mxu0 %vm127_vm0, %v91_v16 }
  0x38   :  { %879 = vmatprep.mubr.msk.bf16.mxu0 %vm127_vm0, %v92_v18  ;;  %910 = vmatpush3.bf16.msra.mxu1 %v1076_v24 }
  0x39   :  { %911 = vmatprep.subr.bf16.mxu1 %v1077_v27 }
  0x3c   :  { %912 = vmatpush3.bf16.msra.mxu1 %v1077_v27 }
  0x3d   :  { %913 = vmatprep.subr.bf16.mxu1 %v1078_v32 }
  0x3f   :  { %880 = vmatmul.mubr.msk.bf16.gmra.mrb[8].mxu0 %vm127_vm0, %v93_v25 }
  0x40   :  { %883 = vmatprep.mubr.msk.bf16.mxu0 %vm127_vm0, %v94_v26  ;;  %914 = vmatpush3.bf16.msra.mxu1 %v1078_v32 }
  0x41   :  { %915 = vmatprep.subr.bf16.mxu1 %v1079_v56 }
  0x44   :  { %916 = vmatpush3.bf16.msra.mxu1 %v1079_v56 }
  0x45   :  { %917 = vmatprep.subr.bf16.mxu1 %v1080_v57 }
  0x47   :  { %884 = vmatmul.mubr.msk.bf16.gmra.mrb[12].mxu0 %vm127_vm0, %v95_v33 }
  0x48   :  { %887 = vmatprep.mubr.msk.bf16.mxu0 %vm127_vm0, %v96_v34  ;;  %918 = vmatpush3.bf16.msra.mxu1 %v1080_v57 }
  0x4f   :  { %888 = vmatmul.mubr.msk.bf16.gmra.mrb[16].mxu0 %vm127_vm0, %v97_v39 }
  0x50   :  { %891 = vmatprep.mubr.msk.bf16.mxu0 %vm127_vm0, %v98_v40 }
  0x57   :  { %892 = vmatmul.mubr.msk.bf16.gmra.mrb[20].mxu0 %vm127_vm0, %v99_v45 }
  0x58   :  { %895 = vmatprep.mubr.msk.bf16.mxu0 %vm127_vm0, %v100_v46 }
  0x5f   :  { %896 = vmatmul.mubr.msk.bf16.gmra.mrb[24].mxu0 %vm127_vm0, %v101_v51 }
  0x60   :  { %899 = vmatprep.mubr.msk.bf16.mxu0 %vm127_vm0, %v102_v52 }
  0x67   :  { %900 = vmatmul.mubr.msk.bf16.gmra.mrb[28].mxu0 %vm127_vm0, %v103_v55 }
 0x102   :  { %v873_v59 = vpop.f32.mrb[0].mxu0 }
 0x103   :  { %v219_v60 = vadd.f32 %v873_v59, %v1342_v58  ;;  %v210_v61 = vpop.f32.mrb[1].mxu0 }
 0x104   :  { %v211_v62 = vadd.f32 %v1342_v58, %v210_v61  ;;  %v874_v63 = vpop.f32.mrb[2].mxu0 }
 0x105   :  { %v222_v0 = vadd.f32 %v874_v63, %v1342_v58  ;;  %v213_v1 = vpop.f32.mrb[3].mxu0  ;;  %v339_v3 = vmax.f32 %v219_v60, 0.0 }
 0x106   :  { %v214_v2 = vadd.f32 %v1342_v58, %v213_v1  ;;  %v337_v5 = vmax.f32 %v211_v62, 0.0 }
 0x107   :  { %v340_v4 = vmax.f32 %v222_v0, 0.0 }
 0x108   :  { %v338_v6 = vmax.f32 %v214_v2, 0.0 }
 0x109   :  { %v370_v7 = vpack.c.bf16 %v340_v4, %v339_v3 }
 0x10a   :  { %v877_v8 = vpop.f32.mrb[4].mxu0  ;;  %v369_v9 = vpack.c.bf16 %v338_v6, %v337_v5 }
 0x10b   :  { %v235_v10 = vadd.f32 %v877_v8, %v1342_v58  ;;  %v226_v11 = vpop.f32.mrb[5].mxu0 }
 0x10c   :  { %v227_v12 = vadd.f32 %v1342_v58, %v226_v11  ;;  %v878_v13 = vpop.f32.mrb[6].mxu0  ;;  %919 = vmatprep.mubr.bf16.mxu1 %v369_v9 }
 0x10d   :  { %v238_v14 = vadd.f32 %v878_v13, %v1342_v58  ;;  %v229_v15 = vpop.f32.mrb[7].mxu0  ;;  %920 = vmatmul.mubr.bf16.vlgmr.msra.gmra.mrb[0].mxu1 %v370_v7  ;;  %v343_v17 = vmax.f32 %v235_v10, 0.0 }
 0x10e   :  { %v230_v16 = vadd.f32 %v1342_v58, %v229_v15  ;;  %v341_v19 = vmax.f32 %v227_v12, 0.0 }
 0x10f   :  { %v344_v18 = vmax.f32 %v238_v14, 0.0 }
 0x110   :  { %v342_v20 = vmax.f32 %v230_v16, 0.0 }
 0x111   :  { %v372_v21 = vpack.c.bf16 %v344_v18, %v343_v17 }
 0x112   :  { %v371_v22 = vpack.c.bf16 %v342_v20, %v341_v19  ;;  %v881_v23 = vpop.f32.mrb[8].mxu0 }
 0x113   :  { %v251_v24 = vadd.f32 %v881_v23, %v1342_v58  ;;  %v242_v25 = vpop.f32.mrb[9].mxu0 }
 0x114   :  { %v243_v26 = vadd.f32 %v1342_v58, %v242_v25  ;;  %v882_v27 = vpop.f32.mrb[10].mxu0  ;;  %923 = vmatprep.mubr.bf16.mxu1 %v371_v22 }
 0x115   :  { %v254_v28 = vadd.f32 %v882_v27, %v1342_v58  ;;  %v245_v29 = vpop.f32.mrb[11].mxu0  ;;  %924 = vmatmul.mubr.bf16.gmra.mrb[4].mxu1 %v372_v21  ;;  %v347_v31 = vmax.f32 %v251_v24, 0.0 }
 0x116   :  { %v246_v30 = vadd.f32 %v1342_v58, %v245_v29  ;;  %v345_v33 = vmax.f32 %v243_v26, 0.0 }
 0x117   :  { %v348_v32 = vmax.f32 %v254_v28, 0.0 }
 0x118   :  { %v346_v34 = vmax.f32 %v246_v30, 0.0 }
 0x119   :  { %v374_v35 = vpack.c.bf16 %v348_v32, %v347_v31 }
 0x11a   :  { %v373_v36 = vpack.c.bf16 %v346_v34, %v345_v33  ;;  %v885_v37 = vpop.f32.mrb[12].mxu0 }
 0x11b   :  { %v267_v38 = vadd.f32 %v885_v37, %v1342_v58  ;;  %v258_v39 = vpop.f32.mrb[13].mxu0 }
 0x11c   :  { %v259_v40 = vadd.f32 %v1342_v58, %v258_v39  ;;  %v886_v41 = vpop.f32.mrb[14].mxu0  ;;  %927 = vmatprep.mubr.bf16.mxu1 %v373_v36 }
 0x11d   :  { %v270_v42 = vadd.f32 %v886_v41, %v1342_v58  ;;  %v261_v43 = vpop.f32.mrb[15].mxu0  ;;  %928 = vmatmul.mubr.bf16.gmra.mrb[8].mxu1 %v374_v35  ;;  %v351_v45 = vmax.f32 %v267_v38, 0.0 }
 0x11e   :  { %v262_v44 = vadd.f32 %v1342_v58, %v261_v43  ;;  %v349_v47 = vmax.f32 %v259_v40, 0.0 }
 0x11f   :  { %v352_v46 = vmax.f32 %v270_v42, 0.0 }
 0x120   :  { %v350_v48 = vmax.f32 %v262_v44, 0.0 }
 0x121   :  { %v376_v49 = vpack.c.bf16 %v352_v46, %v351_v45 }
 0x122   :  { %v375_v50 = vpack.c.bf16 %v350_v48, %v349_v47  ;;  %v889_v51 = vpop.f32.mrb[16].mxu0 }
 0x123   :  { %v283_v52 = vadd.f32 %v889_v51, %v1342_v58  ;;  %v274_v53 = vpop.f32.mrb[17].mxu0 }
 0x124   :  { %v275_v54 = vadd.f32 %v1342_v58, %v274_v53  ;;  %v890_v55 = vpop.f32.mrb[18].mxu0  ;;  %931 = vmatprep.mubr.bf16.mxu1 %v375_v50 }
 0x125   :  { %v286_v56 = vadd.f32 %v890_v55, %v1342_v58  ;;  %v277_v57 = vpop.f32.mrb[19].mxu0  ;;  %932 = vmatmul.mubr.bf16.gmra.mrb[12].mxu1 %v376_v49  ;;  %v355_v60 = vmax.f32 %v283_v52, 0.0 }
 0x126   :  { %v278_v59 = vadd.f32 %v1342_v58, %v277_v57  ;;  %v353_v62 = vmax.f32 %v275_v54, 0.0 }
 0x127   :  { %v356_v61 = vmax.f32 %v286_v56, 0.0 }
 0x128   :  { %v354_v63 = vmax.f32 %v278_v59, 0.0 }
 0x129   :  { %v378_v0 = vpack.c.bf16 %v356_v61, %v355_v60  ;;  %v1389_v60 = vld [vmem:[%s1450_s4] ss:$0 sm:$0xff] }
 0x12a   :  { %v377_v1 = vpack.c.bf16 %v354_v63, %v353_v62  ;;  %v893_v2 = vpop.f32.mrb[20].mxu0 }
 0x12b   :  { %v299_v3 = vadd.f32 %v893_v2, %v1342_v58  ;;  %v290_v4 = vpop.f32.mrb[21].mxu0 }
 0x12c   :  { %v291_v5 = vadd.f32 %v1342_v58, %v290_v4  ;;  %v894_v6 = vpop.f32.mrb[22].mxu0  ;;  %935 = vmatprep.mubr.bf16.mxu1 %v377_v1 }
 0x12d   :  { %v359_v7 = vmax.f32 %v299_v3, 0.0  ;;  %v302_v8 = vadd.f32 %v894_v6, %v1342_v58  ;;  %v293_v9 = vpop.f32.mrb[23].mxu0  ;;  %936 = vmatmul.mubr.bf16.gmra.mrb[16].mxu1 %v378_v0 }
 0x12e   :  { %v357_v10 = vmax.f32 %v291_v5, 0.0  ;;  %v294_v11 = vadd.f32 %v1342_v58, %v293_v9 }
 0x12f   :  { %v360_v12 = vmax.f32 %v302_v8, 0.0 }
 0x130   :  { %v358_v13 = vmax.f32 %v294_v11, 0.0 }
 0x131   :  { %v380_v14 = vpack.c.bf16 %v360_v12, %v359_v7 }
 0x132   :  { %v379_v15 = vpack.c.bf16 %v358_v13, %v357_v10  ;;  %v897_v16 = vpop.f32.mrb[24].mxu0 }
 0x133   :  { %v315_v17 = vadd.f32 %v897_v16, %v1342_v58  ;;  %v306_v18 = vpop.f32.mrb[25].mxu0 }
 0x134   :  { %v307_v19 = vadd.f32 %v1342_v58, %v306_v18  ;;  %v898_v20 = vpop.f32.mrb[26].mxu0  ;;  %939 = vmatprep.mubr.bf16.mxu1 %v379_v15 }
 0x135   :  { %v363_v21 = vmax.f32 %v315_v17, 0.0  ;;  %v318_v22 = vadd.f32 %v898_v20, %v1342_v58  ;;  %v309_v23 = vpop.f32.mrb[27].mxu0  ;;  %940 = vmatmul.mubr.bf16.gmra.mrb[20].mxu1 %v380_v14 }
 0x136   :  { %v361_v24 = vmax.f32 %v307_v19, 0.0  ;;  %v310_v25 = vadd.f32 %v1342_v58, %v309_v23 }
 0x137   :  { %v364_v26 = vmax.f32 %v318_v22, 0.0 }
 0x138   :  { %v362_v27 = vmax.f32 %v310_v25, 0.0 }
 0x139   :  { %v382_v28 = vpack.c.bf16 %v364_v26, %v363_v21 }
 0x13a   :  { %v381_v29 = vpack.c.bf16 %v362_v27, %v361_v24  ;;  %v901_v30 = vpop.f32.mrb[28].mxu0 }
 0x13b   :  { %v331_v31 = vadd.f32 %v901_v30, %v1342_v58  ;;  %v322_v32 = vpop.f32.mrb[29].mxu0 }
 0x13c   :  { %v323_v33 = vadd.f32 %v1342_v58, %v322_v32  ;;  %v902_v34 = vpop.f32.mrb[30].mxu0  ;;  %943 = vmatprep.mubr.bf16.mxu1 %v381_v29 }
 0x13d   :  { %v367_v35 = vmax.f32 %v331_v31, 0.0  ;;  %v334_v36 = vadd.f32 %v902_v34, %v1342_v58  ;;  %v325_v37 = vpop.f32.mrb[31].mxu0  ;;  %944 = vmatmul.mubr.bf16.gmra.mrb[24].mxu1 %v382_v28 }
 0x13e   :  { %v365_v38 = vmax.f32 %v323_v33, 0.0  ;;  %v326_v39 = vadd.f32 %v1342_v58, %v325_v37 }
 0x13f   :  { %v368_v40 = vmax.f32 %v334_v36, 0.0 }
 0x140   :  { %v366_v41 = vmax.f32 %v326_v39, 0.0 }
 0x141   :  { %v384_v42 = vpack.c.bf16 %v368_v40, %v367_v35 }
 0x142   :  { %v383_v43 = vpack.c.bf16 %v366_v41, %v365_v38 }
 0x144   :  { %947 = vmatprep.mubr.bf16.mxu1 %v383_v43 }
 0x145   :  { %948 = vmatmul.mubr.bf16.gmra.mrb[28].mxu1 %v384_v42 }
 0x1e0   :  { %v921_v44 = vpop.f32.mrb[0].mxu1 }
 0x1e1   :  { %v490_v45 = vpop.f32.mrb[1].mxu1  ;;  %v499_v61 = vadd.f32 %v921_v44, %v1389_v60 }
 0x1e2   :  { %v922_v46 = vpop.f32.mrb[2].mxu1  ;;  %v491_v62 = vadd.f32 %v1389_v60, %v490_v45 }
 0x1e3   :  { %v493_v47 = vpop.f32.mrb[3].mxu1  ;;  %v502_v0 = vadd.f32 %v922_v46, %v1389_v60  ;;  %v619_v6 = vmax.f32 %v499_v61, 0.0 }
 0x1e4   :  { %v494_v3 = vadd.f32 %v1389_v60, %v493_v47  ;;  %v617_v10 = vmax.f32 %v491_v62, 0.0 }
 0x1e5   :  { %v620_v13 = vmax.f32 %v502_v0, 0.0 }
 0x1e6   :  { %v618_v16 = vmax.f32 %v494_v3, 0.0 }
 0x1e8   :  { %v925_v48 = vpop.f32.mrb[4].mxu1 }
 0x1e9   :  { %v506_v49 = vpop.f32.mrb[5].mxu1  ;;  %v515_v19 = vadd.f32 %v925_v48, %v1389_v60 }
 0x1ea   :  { %v926_v50 = vpop.f32.mrb[6].mxu1  ;;  %v507_v21 = vadd.f32 %v1389_v60, %v506_v49 }
 0x1eb   :  { %v509_v51 = vpop.f32.mrb[7].mxu1  ;;  %v518_v24 = vadd.f32 %v926_v50, %v1389_v60  ;;  %v623_v30 = vmax.f32 %v515_v19, 0.0 }
 0x1ec   :  { %v510_v27 = vadd.f32 %v1389_v60, %v509_v51  ;;  %v621_v34 = vmax.f32 %v507_v21, 0.0 }
 0x1ed   :  { %v624_v37 = vmax.f32 %v518_v24, 0.0 }
 0x1ee   :  { %v622_v40 = vmax.f32 %v510_v27, 0.0 }
 0x1f0   :  { %v929_v52 = vpop.f32.mrb[8].mxu1 }
 0x1f1   :  { %v522_v53 = vpop.f32.mrb[9].mxu1  ;;  %v531_v43 = vadd.f32 %v929_v52, %v1389_v60 }
 0x1f2   :  { %v930_v54 = vpop.f32.mrb[10].mxu1  ;;  %v523_v45 = vadd.f32 %v1389_v60, %v522_v53 }
 0x1f3   :  { %v1376_v55 = vpop.f32.mrb[11].mxu1  ;;  %v534_v48 = vadd.f32 %v930_v54, %v1389_v60 }
 0x1f4   :  { %v526_v51 = vadd.f32 %v1389_v60, %v1376_v55  ;;  %v625_v53 = vmax.f32 %v523_v45, 0.0 }
 0x1f5   :  { %v628_v54 = vmax.f32 %v534_v48, 0.0 }
 0x1f8   :  { %v1378_v58 = vpop.f32.mrb[12].mxu1 }
 0x1f9   :  { %v1380_v56 = vpop.f32.mrb[13].mxu1  ;;  %v547_v55 = vadd.f32 %v1378_v58, %v1389_v60 }
 0x1fa   :  { %v1382_v57 = vpop.f32.mrb[14].mxu1 }
 0x1fb   :  { %v1384_v59 = vpop.f32.mrb[15].mxu1  ;;  %v631_v58 = vmax.f32 %v547_v55, 0.0 }
 0x200   :  { %v937_v63 = vpop.f32.mrb[16].mxu1 }
 0x201   :  { %v563_v1 = vadd.f32 %v937_v63, %v1389_v60  ;;  %v554_v2 = vpop.f32.mrb[17].mxu1  ;;  %v627_v63 = vmax.f32 %v531_v43, 0.0 }
 0x202   :  { %v555_v4 = vadd.f32 %v1389_v60, %v554_v2  ;;  %v938_v5 = vpop.f32.mrb[18].mxu1 }
 0x203   :  { %v635_v7 = vmax.f32 %v563_v1, 0.0  ;;  %v566_v8 = vadd.f32 %v938_v5, %v1389_v60  ;;  %v557_v9 = vpop.f32.mrb[19].mxu1 }
 0x204   :  { %v633_v11 = vmax.f32 %v555_v4, 0.0  ;;  %v558_v12 = vadd.f32 %v1389_v60, %v557_v9 }
 0x205   :  { %v636_v14 = vmax.f32 %v566_v8, 0.0  ;;  %v961_v15 = vpack.i.bf16 %v619_v6, %v635_v7  ;;  %v626_v6 = vmax.f32 %v526_v51, 0.0 }
 0x206   :  { %v634_v17 = vmax.f32 %v558_v12, 0.0  ;;  %v957_v18 = vpack.i.bf16 %v617_v10, %v633_v11  ;;  %v539_v10 = vadd.f32 %v1389_v60, %v1380_v56 }
 0x207   :  { %v963_v20 = vpack.i.bf16 %v620_v13, %v636_v14  ;;  %v550_v13 = vadd.f32 %v1382_v57, %v1389_v60 }
 0x208   :  { %v941_v22 = vpop.f32.mrb[20].mxu1  ;;  %958 = vxpose.xlu0.b32.start [1/16] %v957_v18, 128  ;;  %v959_v23 = vpack.i.bf16 %v618_v16, %v634_v17  ;;  %v542_v16 = vadd.f32 %v1389_v60, %v1384_v59  ;;  %v629_v21 = vmax.f32 %v539_v10, 0.0 }
 0x209   :  { %v579_v25 = vadd.f32 %v941_v22, %v1389_v60  ;;  %v570_v26 = vpop.f32.mrb[21].mxu1  ;;  %v632_v57 = vmax.f32 %v550_v13, 0.0 }
 0x20a   :  { %v571_v28 = vadd.f32 %v1389_v60, %v570_v26  ;;  %v942_v29 = vpop.f32.mrb[22].mxu1  ;;  %v630_v26 = vmax.f32 %v542_v16, 0.0 }
 0x20b   :  { %v639_v31 = vmax.f32 %v579_v25, 0.0  ;;  %v582_v32 = vadd.f32 %v942_v29, %v1389_v60  ;;  %v573_v33 = vpop.f32.mrb[23].mxu1 }
 0x20c   :  { %v637_v35 = vmax.f32 %v571_v28, 0.0  ;;  %v574_v36 = vadd.f32 %v1389_v60, %v573_v33  ;;  %960 = vxpose.xlu0.b32.cont [2/16] %v959_v23, 128 }
 0x20d   :  { %v640_v38 = vmax.f32 %v582_v32, 0.0  ;;  %v969_v39 = vpack.i.bf16 %v623_v30, %v639_v31  ;;  %v730_v30 = vld [vmem:[%s1452_s6] sm:$0xff] }
 0x20e   :  { %v638_v41 = vmax.f32 %v574_v36, 0.0  ;;  %v965_v42 = vpack.i.bf16 %v621_v34, %v637_v35 }
 0x20f   :  { %v971_v44 = vpack.i.bf16 %v624_v37, %v640_v38 }
 0x210   :  { %v945_v46 = vpop.f32.mrb[24].mxu1  ;;  %962 = vxpose.xlu0.b32.cont [3/16] %v961_v15, 128  ;;  %v967_v47 = vpack.i.bf16 %v622_v40, %v638_v41 }
 0x211   :  { %v595_v49 = vadd.f32 %v945_v46, %v1389_v60  ;;  %v586_v50 = vpop.f32.mrb[25].mxu1 }
 0x212   :  { %v587_v61 = vadd.f32 %v1389_v60, %v586_v50  ;;  %v946_v62 = vpop.f32.mrb[26].mxu1 }
 0x213   :  { %v643_v0 = vmax.f32 %v595_v49, 0.0  ;;  %v598_v52 = vadd.f32 %v946_v62, %v1389_v60  ;;  %v589_v1 = vpop.f32.mrb[27].mxu1 }
 0x214   :  { %v641_v2 = vmax.f32 %v587_v61, 0.0  ;;  %v590_v3 = vadd.f32 %v1389_v60, %v589_v1  ;;  %964 = vxpose.xlu0.b32.cont [4/16] %v963_v20, 128 }
 0x215   :  { %v644_v4 = vmax.f32 %v598_v52, 0.0  ;;  %v977_v5 = vpack.i.bf16 %v627_v63, %v643_v0 }
 0x216   :  { %v642_v7 = vmax.f32 %v590_v3, 0.0  ;;  %v973_v8 = vpack.i.bf16 %v625_v53, %v641_v2 }
 0x217   :  { %v979_v9 = vpack.i.bf16 %v628_v54, %v644_v4 }
 0x218   :  { %v949_v11 = vpop.f32.mrb[28].mxu1  ;;  %966 = vxpose.xlu0.b32.cont [5/16] %v965_v42, 128  ;;  %v975_v12 = vpack.i.bf16 %v626_v6, %v642_v7 }
 0x219   :  { %v611_v14 = vadd.f32 %v949_v11, %v1389_v60  ;;  %v602_v15 = vpop.f32.mrb[29].mxu1 }
 0x21a   :  { %v603_v17 = vadd.f32 %v1389_v60, %v602_v15  ;;  %v950_v18 = vpop.f32.mrb[30].mxu1 }
 0x21b   :  { %v647_v19 = vmax.f32 %v611_v14, 0.0  ;;  %v614_v20 = vadd.f32 %v950_v18, %v1389_v60  ;;  %v605_v56 = vpop.f32.mrb[31].mxu1 }
 0x21c   :  { %v645_v22 = vmax.f32 %v603_v17, 0.0  ;;  %v606_v23 = vadd.f32 %v1389_v60, %v605_v56  ;;  %968 = vxpose.xlu0.b32.cont [6/16] %v967_v47, 128  ;;  %v1161_v60 = vmov 0  }
 0x21d   :  { %v648_v24 = vmax.f32 %v614_v20, 0.0  ;;  %v985_v25 = vpack.i.bf16 %v631_v58, %v647_v19  ;;  %768 = vmatprep.mubr.bf16.mxu0 %v1161_v60  ;;  %1069 = vset.pattern.permute.xlu1 %v1161_v60 }
 0x21e   :  { %v646_v27 = vmax.f32 %v606_v23, 0.0  ;;  %v981_v28 = vpack.i.bf16 %v629_v21, %v645_v22  ;;  %733 = vperm.xlu1 %1069, %v730_v30  }
 0x21f   :  { %v987_v59 = vpack.i.bf16 %v632_v57, %v648_v24 }
 0x220   :  { %970 = vxpose.xlu0.b32.cont [7/16] %v969_v39, 128  ;;  %v983_v29 = vpack.i.bf16 %v630_v26, %v646_v27 }
 0x224   :  { %972 = vxpose.xlu0.b32.cont [8/16] %v971_v44, 128 }
 0x228   :  { %974 = vxpose.xlu0.b32.cont [9/16] %v973_v8, 128 }
 0x22c   :  { %976 = vxpose.xlu0.b32.cont [10/16] %v975_v12, 128 }
 0x230   :  { %978 = vxpose.xlu0.b32.cont [11/16] %v977_v5, 128 }
 0x234   :  { %980 = vxpose.xlu0.b32.cont [12/16] %v979_v9, 128 }
 0x238   :  { %982 = vxpose.xlu0.b32.cont [13/16] %v981_v28, 128 }
 0x23c   :  { %984 = vxpose.xlu0.b32.cont [14/16] %v983_v29, 128 }
 0x240   :  { %986 = vxpose.xlu0.b32.cont [15/16] %v985_v25, 128 }
 0x244   :  { %988 = vxpose.xlu0.b32.end [16/16] %v987_v59, 128 }
 0x26d   :  { %1070 = vset.pattern.permute.xlu0 %v1161_v60 }
 0x288   :  { %v989_v31 = vpop.trf.xlu0 }
 0x289   :  { %v993_v32 = vunpack.i.h.bf16 %v989_v31  ;;  %v990_v33 = vunpack.i.l.bf16 %v989_v31  ;;  %v729_v31 = vld [vmem:[%s1451_s5] sm:$0xf] }
 0x28c   :  { %v994_v34 = vpop.trf.xlu0 }
 0x28d   :  { %v998_v35 = vunpack.i.h.bf16 %v994_v34  ;;  %v995_v36 = vunpack.i.l.bf16 %v994_v34 }
 0x28f   :  { %v714_v37 = vpack.c.bf16 %v995_v36, %v990_v33  ;;  %v713_v38 = vpack.c.bf16 %v998_v35, %v993_v32 }
 0x290   :  { %v999_v39 = vpop.trf.xlu0 }
 0x291   :  { %736 = vmatprep.subr.bf16.mxu0 %v714_v37  ;;  %v1003_v40 = vunpack.i.h.bf16 %v999_v39  ;;  %v1000_v41 = vunpack.i.l.bf16 %v999_v39 }
 0x292   :  { %737 = vmatpush1.bf16.msra.mxu0 %v713_v38 }
 0x294   :  { %v1004_v42 = vpop.trf.xlu0 }
 0x295   :  { %v1008_v43 = vunpack.i.h.bf16 %v1004_v42  ;;  %v1005_v44 = vunpack.i.l.bf16 %v1004_v42 }
 0x297   :  { %v716_v45 = vpack.c.bf16 %v1005_v44, %v1000_v41  ;;  %v715_v46 = vpack.c.bf16 %v1008_v43, %v1003_v40 }
 0x298   :  { %v1009_v47 = vpop.trf.xlu0 }
 0x299   :  { %738 = vmatprep.subr.bf16.mxu0 %v716_v45  ;;  %v1013_v48 = vunpack.i.h.bf16 %v1009_v47  ;;  %v1010_v49 = vunpack.i.l.bf16 %v1009_v47 }
 0x29a   :  { %739 = vmatpush1.bf16.msra.mxu0 %v715_v46 }
 0x29c   :  { %v1014_v50 = vpop.trf.xlu0 }
 0x29d   :  { %v1018_v51 = vunpack.i.h.bf16 %v1014_v50  ;;  %v1015_v61 = vunpack.i.l.bf16 %v1014_v50  ;;  %v734_v32 = vpop.permute.xlu1 %733 }
 0x29f   :  { %v718_v62 = vpack.c.bf16 %v1015_v61, %v1010_v49  ;;  %v717_v63 = vpack.c.bf16 %v1018_v51, %v1013_v48 }
 0x2a0   :  { %v1019_v0 = vpop.trf.xlu0 }
 0x2a1   :  { %740 = vmatprep.subr.bf16.mxu0 %v718_v62  ;;  %v1023_v52 = vunpack.i.h.bf16 %v1019_v0  ;;  %v1020_v1 = vunpack.i.l.bf16 %v1019_v0 }
 0x2a2   :  { %741 = vmatpush1.bf16.msra.mxu0 %v717_v63 }
 0x2a4   :  { %v1024_v53 = vpop.trf.xlu0 }
 0x2a5   :  { %v1028_v2 = vunpack.i.h.bf16 %v1024_v53  ;;  %v1025_v3 = vunpack.i.l.bf16 %v1024_v53 }
 0x2a7   :  { %v720_v54 = vpack.c.bf16 %v1025_v3, %v1020_v1  ;;  %v719_v4 = vpack.c.bf16 %v1028_v2, %v1023_v52 }
 0x2a8   :  { %v1029_v5 = vpop.trf.xlu0 }
 0x2a9   :  { %742 = vmatprep.subr.bf16.mxu0 %v720_v54  ;;  %v1033_v6 = vunpack.i.h.bf16 %v1029_v5  ;;  %v1030_v7 = vunpack.i.l.bf16 %v1029_v5 }
 0x2aa   :  { %743 = vmatpush1.bf16.msra.mxu0 %v719_v4 }
 0x2ac   :  { %v1034_v8 = vpop.trf.xlu0 }
 0x2ad   :  { %v1038_v55 = vunpack.i.h.bf16 %v1034_v8  ;;  %v1035_v9 = vunpack.i.l.bf16 %v1034_v8 }
 0x2af   :  { %v722_v10 = vpack.c.bf16 %v1035_v9, %v1030_v7  ;;  %v721_v11 = vpack.c.bf16 %v1038_v55, %v1033_v6 }
 0x2b0   :  { %v1039_v12 = vpop.trf.xlu0 }
 0x2b1   :  { %744 = vmatprep.subr.bf16.mxu0 %v722_v10  ;;  %v1043_v13 = vunpack.i.h.bf16 %v1039_v12  ;;  %v1040_v14 = vunpack.i.l.bf16 %v1039_v12 }
 0x2b2   :  { %745 = vmatpush1.bf16.msra.mxu0 %v721_v11 }
 0x2b4   :  { %v1044_v15 = vpop.trf.xlu0 }
 0x2b5   :  { %v1048_v16 = vunpack.i.h.bf16 %v1044_v15  ;;  %v1045_v17 = vunpack.i.l.bf16 %v1044_v15 }
 0x2b7   :  { %v724_v18 = vpack.c.bf16 %v1045_v17, %v1040_v14  ;;  %v723_v58 = vpack.c.bf16 %v1048_v16, %v1043_v13 }
 0x2b8   :  { %v1049_v19 = vpop.trf.xlu0 }
 0x2b9   :  { %746 = vmatprep.subr.bf16.mxu0 %v724_v18  ;;  %v1053_v20 = vunpack.i.h.bf16 %v1049_v19  ;;  %v1050_v56 = vunpack.i.l.bf16 %v1049_v19 }
 0x2ba   :  { %747 = vmatpush1.bf16.msra.mxu0 %v723_v58 }
 0x2bc   :  { %v1054_v21 = vpop.trf.xlu0 }
 0x2bd   :  { %v1058_v22 = vunpack.i.h.bf16 %v1054_v21  ;;  %v1055_v23 = vunpack.i.l.bf16 %v1054_v21 }
 0x2bf   :  { %v726_v57 = vpack.c.bf16 %v1055_v23, %v1050_v56  ;;  %v725_v24 = vpack.c.bf16 %v1058_v22, %v1053_v20 }
 0x2c0   :  { %v1059_v25 = vpop.trf.xlu0 }
 0x2c1   :  { %748 = vmatprep.subr.bf16.mxu0 %v726_v57  ;;  %v1063_v26 = vunpack.i.h.bf16 %v1059_v25  ;;  %v1060_v27 = vunpack.i.l.bf16 %v1059_v25 }
 0x2c2   :  { %749 = vmatpush1.bf16.msra.mxu0 %v725_v24 }
 0x2c4   :  { %v1064_v28 = vpop.trf.xlu0 }
 0x2c5   :  { %v1068_v59 = vunpack.i.h.bf16 %v1064_v28  ;;  %v1065_v29 = vunpack.i.l.bf16 %v1064_v28 }
 0x2c7   :  { %v727_v60 = vpack.c.bf16 %v1068_v59, %v1063_v26  ;;  %v728_v30 = vpack.c.bf16 %v1065_v29, %v1060_v27 }
 0x2c9   :  { %750 = vmatprep.subr.bf16.mxu0 %v728_v30 }
 0x2ca   :  { %751 = vmatpush1.bf16.msra.mxu0 %v727_v60 }
 0x2cd   :  { %769 = vmatmul.mubr.bf16.vlgmr.msra.gmra.mrb[32].mxu0 %v729_v31 }
 0x3a0   :  { %v770_v33 = vpop.f32.mrb[32].mxu0 }
 0x3a1   :  { %v772_v34 = vpop.f32.mrb[33].mxu0  ;;  %v771_v35 = vadd.f32 %v770_v33, %v734_v32 }
 0x3a2   :  { %v774_v36 = vpop.f32.mrb[34].mxu0  ;;  %v773_v37 = vadd.f32 %v772_v34, %v734_v32 }
 0x3a3   :  { %1081 = vtanh.f32 %v771_v35  ;;  %v775_v38 = vpop.f32.mrb[35].mxu0 }
 0x3a4   :  { %1083 = vtanh.f32 %v773_v37 }
 0x3ad   :  { %v1082_v39 = vpop.eup %1081 }
 0x3ae   :  { %v1084_v40 = vpop.eup %1083  ;;  %779 = vst [vmem:[#allocation7] sm:$0xff] %v1082_v39 }
 0x3af   :  { %780 = vst [vmem:[#allocation7 + $0x8] sm:$0xff] %v1084_v40 }
 0x3b0   :  { %1140 = shalt.err (!%p1137_p6)
}
 0x3b1   :  { %s1141_s24 = scalar_lea.hbm %s1453_s7, 256 }
 0x3b2   :  { %p1142_p7 = scmp.ne.s32.totalorder %s1453_s7, %s1141_s24  ;;  %p1145_p8 = scmp.lt.u32.totalorder %s1141_s24, %s1453_s7 }
 0x3b4   :  { %p1147_p9 = pnand %p1145_p8, %p1142_p7 }
 0x3b6   :  { %1150 = shalt.err (!%p1147_p9)
}
 0x3b7   :  { %790 = dma.vmem_to_hbm [thread:$0]  %s788_s21, 256, %s1453_s7, [#allocation4]  }
 0x3b8   :  { %1155 = dma.done.wait [#allocation4], 256  }
 0x3b9   :  { %1156 = vsyncadd [#allocation4], 4294967040 }
 0x3ba   :  { %794 = vsyncpa [#allocation3], 1 }
 0x3bb   :  { %795 = vsyncpa [#allocation6], 1 }
 0x3bc   :  { %796 = vsyncpa [#allocation4], 1 }

</bundles_post_ra>
